<compile_context>
chip_gen: v5e
topology: v5e:2x2
jax: 0.10.0
libtpu: 0.0.40
codegen_flags: <defaults>
</compile_context>

<pallas_src>
import jax
import jax.numpy as jnp
from jax.experimental import pallas as pl
from jax.experimental.pallas import tpu as pltpu


def _round_up(x, m):
    return (x + m - 1) // m * m


def _pick_tile(padded_size, candidates):
    for c in candidates:
        if padded_size % c == 0:
            return c
    return candidates[-1]


def _make_bce_kernel(n_actual, tile_n, use_mask, needs_col_mask):
    """Builds the kernel body.

    Grid = (batch tiles, label tiles). The label axis (grid axis 1) is the
    reduction axis; acc_ref (VMEM scratch) holds running per-row sums and the
    mean is stored on the last label tile.
    """

    def kernel(*refs):
        if use_mask:
            x_ref, y_ref, m_ref, o_ref, acc_ref = refs
        else:
            x_ref, y_ref, o_ref, acc_ref = refs
            m_ref = None

        k = pl.program_id(1)

        @pl.when(k == 0)
        def _():
            acc_ref[...] = jnp.zeros_like(acc_ref)

        x = x_ref[...].astype(jnp.float32)
        y = y_ref[...].astype(jnp.float32)

        # Numerically-stable BCE-with-logits (same formula PyTorch uses):
        #   loss = max(x, 0) - x*y + log(1 + exp(-|x|))
        per_elem = jnp.maximum(x, 0.0) - x * y + jnp.log1p(jnp.exp(-jnp.abs(x)))

        if use_mask:
            per_elem = m_ref[...].astype(jnp.float32) * per_elem
        if needs_col_mask:
            # Zero out columns that exist only because of 128-lane padding
            # (only needed in the no-mask variant; a provided mask is padded
            # with zeros and already handles it).
            col = k * tile_n + jax.lax.broadcasted_iota(jnp.int32, per_elem.shape, 1)
            per_elem = jnp.where(col < n_actual, per_elem, 0.0)

        acc_ref[...] += jnp.sum(per_elem, axis=1, keepdims=True)

        @pl.when(k == pl.num_programs(1) - 1)
        def _():
            # mean over dim=1 divides by the (unpadded) label count, matching
            # PyTorch `out.mean(dim=1)` (NOT a masked mean).
            o_ref[...] = acc_ref[...] * (1.0 / n_actual)

    # TODO(synk): the PyTorch forward print()s the un-reduced loss tensor; that
    # debug side-effect is not replicated in-kernel.
    return kernel


def sigmoid_bce_loss(inputs, target, mask=None):
    """Forward pass of SigmoidBCELoss.

    inputs/target[/mask]: (B, N). Any float/int dtype (keep bf16 as bf16 to
    halve HBM traffic; math runs in f32 in-kernel). Returns (B,) float32.
    """
    B, N = inputs.shape
    use_mask = mask is not None

    # ---- alignment + tile selection ----------------------------------------
    b_pad = _round_up(B, 8)      # sublane alignment
    n_pad = _round_up(N, 128)    # lane alignment
    tile_b = _pick_tile(b_pad, (512, 256, 128, 64, 32, 16, 8))
    tile_n = _pick_tile(n_pad, (1024, 512, 256, 128))
    grid = (b_pad // tile_b, n_pad // tile_n)

    needs_col_mask = (not use_mask) and (n_pad != N)

    def pad(a):
        if a.shape == (b_pad, n_pad):
            return a
        return jnp.pad(a, ((0, b_pad - B), (0, n_pad - N)))  # zero padding

    operands = [pad(inputs), pad(target)]
    if use_mask:
        operands.append(pad(mask))  # zero-padded mask also zeroes padded cols/rows

    in_specs = [pl.BlockSpec((tile_b, tile_n), lambda i, k: (i, k))
                for _ in operands]

    itemsize = jnp.dtype(inputs.dtype).itemsize
    cost = pl.CostEstimate(
        flops=7 * b_pad * n_pad,
        transcendentals=2 * b_pad * n_pad,
        bytes_accessed=len(operands) * b_pad * n_pad * itemsize + b_pad * 4,
    )

    out = pl.pallas_call(
        _make_bce_kernel(N, tile_n, use_mask, needs_col_mask),
        out_shape=jax.ShapeDtypeStruct((b_pad, 1), jnp.float32),
        grid=grid,
        in_specs=in_specs,
        out_specs=pl.BlockSpec((tile_b, 1), lambda i, k: (i, 0)),
        scratch_shapes=[pltpu.VMEM((tile_b, 1), jnp.float32)],
        compiler_params=pltpu.CompilerParams(
            dimension_semantics=("parallel", "arbitrary"),
            vmem_limit_bytes=32 * 1024 * 1024,
        ),
        cost_estimate=cost,
    )(*operands)

    return out[:B, 0]


def _reference(inputs, target, mask=None):
    x = inputs.astype(jnp.float32)
    y = target.astype(jnp.float32)
    per = jnp.maximum(x, 0.0) - x * y + jnp.log1p(jnp.exp(-jnp.abs(x)))
    if mask is not None:
        per = mask.astype(jnp.float32) * per
    return per.mean(axis=1)


if __name__ == "__main__":
    key = jax.random.PRNGKey(0)

    # --- case 1: exact shapes/mask of the PyTorch example (2, 4) -------------
    k1, k2, key = jax.random.split(key, 3)
    inputs = jax.random.normal(k1, (2, 4), dtype=jnp.float32)
    target = jax.random.bernoulli(k2, 0.5, (2, 4)).astype(jnp.float32)
    mask = jnp.array([[1, 1, 1, 1], [1, 1, 0, 0]], dtype=jnp.float32)
    out1 = jax.block_until_ready(sigmoid_bce_loss(inputs, target, mask))
    ref1 = _reference(inputs, target, mask)
    assert out1.shape == (2,)
    assert jnp.allclose(out1, ref1, atol=1e-4, rtol=1e-4), (out1, ref1)

    # --- case 2: mask=None specialization + multi-tile grid + lane padding ---
    k1, k2, key = jax.random.split(key, 3)
    B, N = 20, 300  # pads to (24, 384) -> grid (3, 3), column-mask path
    inputs = jax.random.normal(k1, (B, N), dtype=jnp.float32)
    target = jax.random.bernoulli(k2, 0.5, (B, N)).astype(jnp.float32)
    out2 = jax.block_until_ready(sigmoid_bce_loss(inputs, target))
    ref2 = _reference(inputs, target)
    assert out2.shape == (B,)
    assert jnp.allclose(out2, ref2, atol=1e-4, rtol=1e-4), (out2, ref2)

    # --- case 3: bf16 inputs (halved HBM bytes), masked -----------------------
    k1, k2, k3 = jax.random.split(key, 3)
    B, N = 16, 256
    inputs = jax.random.normal(k1, (B, N), dtype=jnp.bfloat16)
    target = jax.random.bernoulli(k2, 0.5, (B, N)).astype(jnp.bfloat16)
    mask = jax.random.bernoulli(k3, 0.7, (B, N)).astype(jnp.bfloat16)
    out3 = jax.block_until_ready(sigmoid_bce_loss(inputs, target, mask))
    ref3 = _reference(inputs, target, mask)
    assert out3.shape == (B,)
    assert jnp.allclose(out3, ref3, atol=1e-4, rtol=1e-4), (out3, ref3)

    print("KERNEL_OK")
</pallas_src>

<mosaic_0001>
module attributes {stable_mosaic.version = 11 : i64} {
  func.func @kernel(%arg0: i32, %arg1: i32, %arg2: memref<8x128xf32, #tpu.memory_space<vmem>>, %arg3: memref<8x128xf32, #tpu.memory_space<vmem>>, %arg4: memref<8x128xf32, #tpu.memory_space<vmem>>, %arg5: memref<8x1xf32, #tpu.memory_space<vmem>>, %arg6: memref<8x1xf32, #tpu.memory_space<vmem>>) attributes {dimension_semantics = [#tpu.dimension_semantics<parallel>, #tpu.dimension_semantics<arbitrary>], iteration_bounds = array<i64: 1, 1>, scalar_prefetch = 0 : i64, scratch_operands = 1 : i64, tpu.core_type = #tpu.core_type<tc>, window_params = [{transform_indices = @transform_0, window_bounds = array<i64: 8, 128>}, {transform_indices = @transform_1, window_bounds = array<i64: 8, 128>}, {transform_indices = @transform_2, window_bounds = array<i64: 8, 128>}, {transform_indices = @transform_3, window_bounds = array<i64: 8, 1>}]} {
    %c0_i32 = arith.constant 0 : i32
    %0 = arith.cmpi eq, %arg1, %c0_i32 : i32
    %1 = arith.extui %0 : i1 to i32
    %c0_i32_0 = arith.constant 0 : i32
    %2 = arith.cmpi ne, %1, %c0_i32_0 : i32
    scf.if %2 {
      %cst_14 = arith.constant 0.000000e+00 : f32
      %25 = vector.broadcast %cst_14 : f32 to vector<8x1xf32>
      %c0_15 = arith.constant 0 : index
      %c0_16 = arith.constant 0 : index
      %26 = vector.load %arg6[%c0_15, %c0_16] : memref<8x1xf32, #tpu.memory_space<vmem>>, vector<8x1xf32>
      tpu.vector_store %arg6[%c0_15, %c0_16], %25 {strides = array<i32>} : memref<8x1xf32, #tpu.memory_space<vmem>>, vector<8x1xf32>,
    } else {
    }
    %c0 = arith.constant 0 : index
    %c0_1 = arith.constant 0 : index
    %3 = vector.load %arg2[%c0, %c0_1] : memref<8x128xf32, #tpu.memory_space<vmem>>, vector<8x128xf32>
    %c0_2 = arith.constant 0 : index
    %c0_3 = arith.constant 0 : index
    %4 = vector.load %arg3[%c0_2, %c0_3] : memref<8x128xf32, #tpu.memory_space<vmem>>, vector<8x128xf32>
    %cst = arith.constant 0.000000e+00 : f32
    %5 = vector.broadcast %cst : f32 to vector<8x128xf32>
    %6 = arith.maximumf %3, %5 : vector<8x128xf32>
    %7 = arith.mulf %3, %4 : vector<8x128xf32>
    %8 = arith.subf %6, %7 : vector<8x128xf32>
    %9 = math.absf %3 : vector<8x128xf32>
    %cst_4 = arith.constant 0.000000e+00 : f32
    %10 = vector.broadcast %cst_4 : f32 to vector<8x128xf32>
    %11 = arith.subf %10, %9 : vector<8x128xf32>
    %12 = math.exp %11 : vector<8x128xf32>
    %13 = math.log1p %12 : vector<8x128xf32>
    %14 = arith.addf %8, %13 : vector<8x128xf32>
    %c0_5 = arith.constant 0 : index
    %c0_6 = arith.constant 0 : index
    %15 = vector.load %arg4[%c0_5, %c0_6] : memref<8x128xf32, #tpu.memory_space<vmem>>, vector<8x128xf32>
    %16 = arith.mulf %15, %14 : vector<8x128xf32>
    %c0_7 = arith.constant 0 : index
    %c0_8 = arith.constant 0 : index
    %17 = vector.load %arg6[%c0_7, %c0_8] : memref<8x1xf32, #tpu.memory_space<vmem>>, vector<8x1xf32>
    %cst_9 = arith.constant dense<0.000000e+00> : vector<8xf32>
    %18 = vector.multi_reduction <add>, %16, %cst_9 [1] : vector<8x128xf32> to vector<8xf32>
    %19 = vector.shape_cast %18 : vector<8xf32> to vector<8x1xf32>
    %20 = arith.addf %17, %19 : vector<8x1xf32>
    %c0_10 = arith.constant 0 : index
    %c0_11 = arith.constant 0 : index
    %21 = vector.load %arg6[%c0_10, %c0_11] : memref<8x1xf32, #tpu.memory_space<vmem>>, vector<8x1xf32>
    tpu.vector_store %arg6[%c0_10, %c0_11], %20 {strides = array<i32>} : memref<8x1xf32, #tpu.memory_space<vmem>>, vector<8x1xf32>,
    %c0_i32_12 = arith.constant 0 : i32
    %22 = arith.cmpi eq, %arg1, %c0_i32_12 : i32
    %23 = arith.extui %22 : i1 to i32
    %c0_i32_13 = arith.constant 0 : i32
    %24 = arith.cmpi ne, %23, %c0_i32_13 : i32
    scf.if %24 {
      %c0_14 = arith.constant 0 : index
      %c0_15 = arith.constant 0 : index
      %25 = vector.load %arg6[%c0_14, %c0_15] : memref<8x1xf32, #tpu.memory_space<vmem>>, vector<8x1xf32>
      %cst_16 = arith.constant 2.500000e-01 : f32
      %26 = vector.broadcast %cst_16 : f32 to vector<8x1xf32>
      %27 = arith.mulf %25, %26 : vector<8x1xf32>
      %c0_17 = arith.constant 0 : index
      %c0_18 = arith.constant 0 : index
      %28 = vector.load %arg5[%c0_17, %c0_18] : memref<8x1xf32, #tpu.memory_space<vmem>>, vector<8x1xf32>
      tpu.vector_store %arg5[%c0_17, %c0_18], %27 {strides = array<i32>} : memref<8x1xf32, #tpu.memory_space<vmem>>, vector<8x1xf32>,
    } else {
    }
    return
  }
  func.func @transform_0(%arg0: i32, %arg1: i32) -> (i32, i32) {
    %c0_i32 = arith.constant 0 : i32
    return %arg0, %arg1 : i32, i32
  }
  func.func @transform_1(%arg0: i32, %arg1: i32) -> (i32, i32) {
    %c0_i32 = arith.constant 0 : i32
    return %arg0, %arg1 : i32, i32
  }
  func.func @transform_2(%arg0: i32, %arg1: i32) -> (i32, i32) {
    %c0_i32 = arith.constant 0 : i32
    return %arg0, %arg1 : i32, i32
  }
  func.func @transform_3(%arg0: i32, %arg1: i32) -> (i32, i32) {
    %c0_i32 = arith.constant 0 : i32
    %c0_i32_0 = arith.constant 0 : i32
    return %arg0, %c0_i32 : i32, i32
  }
}

</mosaic_0001>

<bundles_post_ra>
// kernel: tpu_custom_call.1
= control target key start
LH: loop header
LB: loop body
LE: loop exit
PB: predicated region body
PF: predicated region fallthrough
CT: control target
= control target key end

     0   :  { %8 = vsyncpa [#allocation4], 0  ;;  %s223_s0 = inlined_call_operand.hbm [shape: f32[8,128], index: 0, kind: input, shape index: {}]   ;;  %s224_s1 = inlined_call_operand.hbm [shape: f32[8,128], index: 1, kind: input, shape index: {}]   ;;  %s225_s2 = inlined_call_operand.hbm [shape: f32[8,128], index: 2, kind: input, shape index: {}]   ;;  %s226_s3 = inlined_call_operand.vmem [shape: f32[8,1], index: 3, kind: output, shape index: {}]  }
   0x1   :  { %9 = vsyncpa [#allocation6], 0  ;;  %s26_s14 = sshll.u32 %s224_s1, 4  ;;  %s184_s15 = smov [#allocation5]   ;;  %s27_s14 = int_to_ptr.hbm [resolvable:$true] %s26_s14 }
   0x2   :  { %s28_s16 = sshll.u32 %s184_s15, 4  ;;  %s15_s19 = sshll.u32 %s223_s0, 4  ;;  %s29_s16 = int_to_ptr.vmem [resolvable:$true] %s28_s16  ;;  %s16_s19 = int_to_ptr.hbm [resolvable:$true] %s15_s19 }
   0x3   :  { %31 = dma.hbm_to_vmem [thread:$0]  %s27_s14, 128, %s29_s16, [#allocation6]  }
   0x4   :  { %s185_s20 = smov [#allocation3]   ;;  %s37_s24 = sshll.u32 %s225_s2, 4  ;;  %s38_s24 = int_to_ptr.hbm [resolvable:$true] %s37_s24 }
   0x5   :  { %s17_s21 = sshll.u32 %s185_s20, 4  ;;  %s186_s1 = smov [#allocation7]   ;;  %s18_s21 = int_to_ptr.vmem [resolvable:$true] %s17_s21 }
   0x6   :  { %20 = dma.hbm_to_vmem [thread:$0]  %s16_s19, 128, %s18_s21, [#allocation4]  }
   0x7   :  { %s39_s25 = sshll.u32 %s186_s1, 4  ;;  %s40_s25 = int_to_ptr.vmem [resolvable:$true] %s39_s25 }
   0x8   :  { %42 = dma.hbm_to_vmem [thread:$0]  %s38_s24, 128, %s40_s25, [#allocation6]  }
   0x9   :  { %180 = dma.done.wait [#allocation4], 128  }
   0xa   :  { %181 = vsyncadd [#allocation4], 4294967168 }
   0xb   :  { %182 = dma.done.wait [#allocation6], 256  }
   0xc   :  { %183 = vsyncadd [#allocation6], 4294967040  ;;  %vm59_vm0 = vcmask 7168   ;;  %v187_v0 = vmov 0.0   ;;  %v61_v1 = vld [vmem:[#allocation3] sm:$0xff]  ;;  %v62_v8 = vld [vmem:[#allocation5] sm:$0xff] }
   0xd   :  { %60 = vst.msk [vmem:[#allocation2] sm:$0xff] %vm59_vm0, %v187_v0  ;;  %v66_v2 = vand.u32 2147483647, %v61_v1  ;;  %v63_v10 = vmax.f32 %v61_v1, 0.0  ;;  %v64_v11 = vmul.f32 %v62_v8, %v61_v1  ;;  %v80_v18 = vld [vmem:[#allocation7] sm:$0xff] }
   0xf   :  { %v67_v3 = vsub.f32 0.0, %v66_v2  ;;  %v65_v15 = vsub.f32 %v63_v10, %v64_v11 }
  0x11   :  { %v68_v4 = vmul.f32 1.442695, %v67_v3 }
  0x13   :  { %104 = vpow2.f32 %v68_v4 }
  0x14   :  { %v82_v21 = vld [vmem:[#allocation2] sm:$0xff] }
  0x19   :  { %v105_v5 = vpop.eup %104 }
  0x1a   :  { %v70_v6 = vadd.f32 1.0, %v105_v5  ;;  %v73_v7 = vmul.f32 -0.5, %v105_v5  ;;  %v76_v12 = vand.u32 2147483647, %v105_v5 }
  0x1c   :  { %106 = vlog2.f32 %v70_v6  ;;  %v74_v9 = vadd.f32 1.0, %v73_v7  ;;  %vm77_vm1 = vcmp.lt.f32.partialorder %v76_v12, 0.0004427343 }
  0x1e   :  { %v75_v13 = vmul.f32 %v105_v5, %v74_v9 }
  0x22   :  { %v107_v14 = vpop.eup %106 }
  0x23   :  { %v72_v16 = vmul.f32 0.6931472, %v107_v14 }
  0x25   :  { %v78_v17 = vsel %vm77_vm1, %v75_v13, %v72_v16 }
  0x26   :  { %v79_v19 = vadd.f32 %v78_v17, %v65_v15 }
  0x28   :  { %v81_v20 = vmul.f32 %v80_v18, %v79_v19 }
  0x2a   :  { %83 = vadd.xlane.f32.xlu0 %v81_v20 }
  0x9d   :  { %v84_v22 = vpop.xlane.xlu0 %83 }
  0x9e   :  { %v85_v23 = vadd.f32 %v84_v22, %v82_v21 }
  0xa0   :  { %87 = vst.msk [vmem:[#allocation2] sm:$0xff] %vm59_vm0, %v85_v23 }
  0xa7   :  { %v91_v24 = vld [vmem:[#allocation2] sm:$0xff] }
  0xa8   :  { %v92_v25 = vmul.f32 0.25, %v91_v24 }
  0xaa   :  { %93 = vst.msk [vmem:[%s226_s3] sm:$0xff] %vm59_vm0, %v92_v25 }
  0xab   :  { %98 = vsyncpa [#allocation4], 1 }
  0xac   :  { %99 = vsyncpa [#allocation6], 1 }

</bundles_post_ra>
